<compile_context>
chip_gen: v6e
topology: v6e:2x2x1
jax: 0.10.0
libtpu: 0.0.40
codegen_flags: <defaults>
</compile_context>

<pallas_src>
import functools

import jax
import jax.numpy as jnp
from jax.experimental import pallas as pl
from jax.experimental.pallas import tpu as pltpu


def _round_up(x, m):
    return ((x + m - 1) // m) * m


def _cdiv(a, b):
    return -(-a // b)


def _vocab_tiling(vocab, vocab_tile):
    """Lane-dense vocab tiling that minimizes padding.

    Returns (tn, n_vtiles, vocab_p) with tn a multiple of 128, tn <= vocab_tile
    (rounded to 128), n_vtiles = cdiv(vocab, tn) (so no fully-out-of-bounds
    tile) and vocab_p = n_vtiles * tn (the padded width of Wp^T / bp).
    """
    v128 = _round_up(vocab, 128)
    vt = max(128, _round_up(vocab_tile, 128))
    n0 = max(1, _cdiv(v128, vt))
    tn = _round_up(_cdiv(v128, n0), 128)
    n_vtiles = _cdiv(vocab, tn)
    return tn, n_vtiles, tn * n_vtiles


def _select_row_tile(rows, row_tile):
    """Row tile: multiple of 16 (bf16 sublane packing), <= row_tile, minimal
    padding, and at least 2 row tiles when rows permit (v7x has 2 TCs)."""
    rows16 = _round_up(rows, 16)
    rt = max(16, _round_up(row_tile, 16))
    n = _cdiv(rows16, rt)
    if n < 2 and rows16 >= 32:
        n = 2
    return _round_up(_cdiv(rows16, n), 16)


def _vmem_budget_bytes():
    """Per-generation VMEM budget with headroom (v7x: ~56 MiB of 64;
    v5e/v6e: ~100 MiB of 128)."""
    try:
        cap = int(pltpu.get_tpu_info().vmem_capacity_bytes)
    except Exception:
        cap = 64 * 1024 * 1024  # conservative fallback
    return int(min(cap - 8 * 1024 * 1024, 100 * 1024 * 1024))


def _vmem_estimate(tm, tn, dims, dim, x_bytes, cdt_bytes, out_bytes):
    est = 0
    for d in dims:
        est += 2 * tm * d * x_bytes        # x_i tiles (double buffered)
        est += 2 * d * dim * cdt_bytes     # Wb_i^T slices (conservatively x2)
    est += 2 * dim * 4                     # bb
    est += 2 * dim * tn * cdt_bytes        # Wp^T tile
    est += 2 * tn * 4                      # bp tile
    est += 2 * tm * tn * out_bytes         # output tile
    est += tm * dim * cdt_bytes            # h scratch (compute dtype)
    return est


def prepare_bottleneck_params(wb_t, bb, wp_t, bp, out_embed_dims,
                              compute_dtype=jnp.bfloat16, vocab_tile=2048):
    """Load-time parameter prep (run ONCE, reuse across calls).

    wb_t : [Dsum, dim]  bottleneck weight, pre-transposed
    bb   : [dim]
    wp_t : [dim, vocab] output projection weight, pre-transposed
    bp   : [vocab]

    Returns (wb_slices, bb2, wp_pad, bp_pad): Wb^T split per decoder and cast
    to compute_dtype, biases as f32 row vectors, Wp^T cast + zero-padded along
    vocab to the tile grid implied by (vocab, vocab_tile).
    """
    dim = int(wb_t.shape[1])
    vocab = int(wp_t.shape[1])
    _, _, vocab_p = _vocab_tiling(vocab, vocab_tile)

    wb_slices = []
    off = 0
    for d in out_embed_dims:
        wb_slices.append(jnp.asarray(wb_t[off:off + d, :], dtype=compute_dtype))
        off += d

    bb2 = jnp.asarray(bb, jnp.float32).reshape(1, dim)
    wp_pad = jnp.asarray(wp_t, dtype=compute_dtype)
    bp_pad = jnp.asarray(bp, jnp.float32).reshape(1, vocab)
    if vocab_p != vocab:
        wp_pad = jnp.pad(wp_pad, ((0, 0), (0, vocab_p - vocab)))
        bp_pad = jnp.pad(bp_pad, ((0, 0), (0, vocab_p - vocab)))
    return tuple(wb_slices), bb2, wp_pad, bp_pad


def _make_bottleneck_kernel(n_dec):
    """Kernel over grid (row_tiles, vocab_tiles); vocab is the inner axis."""

    def kernel(*refs):
        x_refs = refs[:n_dec]                        # each [tm, D_i]
        wb_refs = refs[n_dec:2 * n_dec]              # each [D_i, dim] (cdt)
        bb_ref, wp_ref, bp_ref, o_ref, h_ref = refs[2 * n_dec:]
        # bb_ref [1, dim] f32, wp_ref [dim, tn] cdt, bp_ref [1, tn] f32,
        # o_ref [tm, tn], h_ref VMEM scratch [tm, dim] cdt.
        j = pl.program_id(1)

        @pl.when(j == 0)
        def _():
            # Bottleneck matmul once per row tile; f32 accumulation, single
            # cast into the compute-dtype scratch reused for every vocab tile.
            acc = jnp.dot(x_refs[0][...].astype(wb_refs[0].dtype),
                          wb_refs[0][...], preferred_element_type=jnp.float32)
            for xr, wr in zip(x_refs[1:], wb_refs[1:]):
                acc = acc + jnp.dot(xr[...].astype(wr.dtype), wr[...],
                                    preferred_element_type=jnp.float32)
            h_ref[...] = (acc + bb_ref[...]).astype(h_ref.dtype)

        logits = jnp.dot(h_ref[...], wp_ref[...],
                         preferred_element_type=jnp.float32) + bp_ref[...]
        o_ref[...] = logits.astype(o_ref.dtype)

    return kernel


@functools.partial(
    jax.jit,
    static_argnames=("vocab_size", "row_tile", "vocab_tile", "out_dtype"),
)
def bottleneck_combination_forward(
    unprojected_outs,   # tuple of [B, T, D_i]
    wb_slices,          # tuple of [D_i, dim]  (from prepare_bottleneck_params)
    bb2,                # [1, dim] f32
    wp_pad,             # [dim, vocab_p] compute dtype, vocab zero-padded
    bp_pad,             # [1, vocab_p] f32
    *,
    vocab_size,         # original (unpadded) vocab size
    row_tile=512,
    vocab_tile=2048,    # must match prepare_bottleneck_params
    out_dtype=None,     # e.g. jnp.bfloat16 to halve logits writeback
):
    n_dec = len(unprojected_outs)
    B, T = unprojected_outs[0].shape[:2]
    dims = tuple(int(x.shape[2]) for x in unprojected_outs)
    Dsum = sum(dims)
    dim = int(wb_slices[0].shape[1])
    rows = B * T
    vocab = int(vocab_size)

    cdt = wb_slices[0].dtype
    odt = jnp.dtype(out_dtype) if out_dtype is not None else unprojected_outs[0].dtype
    x_bytes = jnp.dtype(unprojected_outs[0].dtype).itemsize
    cdt_bytes = jnp.dtype(cdt).itemsize
    out_bytes = jnp.dtype(odt).itemsize

    # ---- Vocab (N) tiling must agree with prepare-time padding. ----
    tn, n_vtiles, vocab_p = _vocab_tiling(vocab, vocab_tile)
    assert wp_pad.shape == (dim, vocab_p), (
        "wp_pad was prepared with a different vocab_tile / vocab_size")
    assert bp_pad.shape == (1, vocab_p)

    # ---- Row (M) tiling: padding-minimizing, megacore-aware, VMEM-checked. ----
    tm = _select_row_tile(rows, row_tile)
    budget = _vmem_budget_bytes()
    while tm > 16 and _vmem_estimate(tm, tn, dims, dim,
                                     x_bytes, cdt_bytes, out_bytes) > budget:
        tm = max(16, _round_up(tm // 2, 16))
    n_row_tiles = _cdiv(rows, tm)
    est = _vmem_estimate(tm, tn, dims, dim, x_bytes, cdt_bytes, out_bytes)
    vmem_limit = int(min(budget, max(32 * 1024 * 1024, 2 * est)))

    # Flatten [B,T,D_i] -> [rows, D_i]; no concat, no cast, no padding here
    # (reshape is free; the cast to compute dtype happens in-kernel, and
    # ragged boundary blocks are handled by the Pallas pipeline masking).
    xs = [x.reshape(rows, d) for x, d in zip(unprojected_outs, dims)]

    grid = (n_row_tiles, n_vtiles)

    in_specs = (
        [pl.BlockSpec((tm, d), lambda i, j: (i, 0)) for d in dims]      # x_i tiles
        + [pl.BlockSpec((d, dim), lambda i, j: (0, 0)) for d in dims]   # Wb_i^T resident
        + [
            pl.BlockSpec((1, dim), lambda i, j: (0, 0)),                # bb
            pl.BlockSpec((dim, tn), lambda i, j: (0, j)),               # Wp^T tile
            pl.BlockSpec((1, tn), lambda i, j: (0, j)),                 # bp tile
        ]
    )
    # Exact-shaped output: ragged last row/vocab blocks get masked stores,
    # so no post-kernel slice copy over the logits is needed.
    out_specs = pl.BlockSpec((tm, tn), lambda i, j: (i, j))

    cost = pl.CostEstimate(
        flops=2 * rows * Dsum * dim + 2 * rows * dim * vocab_p,
        transcendentals=0,
        bytes_accessed=int(
            rows * Dsum * x_bytes                          # activations
            + Dsum * dim * cdt_bytes                       # Wb
            + n_row_tiles * dim * vocab_p * cdt_bytes      # Wp streamed per row tile
            + n_row_tiles * (dim + vocab_p) * 4            # biases
            + rows * vocab * out_bytes                     # logits writeback
        ),
    )

    logits2 = pl.pallas_call(
        _make_bottleneck_kernel(n_dec),
        out_shape=jax.ShapeDtypeStruct((rows, vocab), odt),
        grid_spec=pltpu.PrefetchScalarGridSpec(
            num_scalar_prefetch=0,
            grid=grid,
            in_specs=in_specs,
            out_specs=out_specs,
            scratch_shapes=[pltpu.VMEM((tm, dim), cdt)],   # h in compute dtype
        ),
        compiler_params=pltpu.CompilerParams(
            dimension_semantics=("parallel", "arbitrary"),
            vmem_limit_bytes=vmem_limit,
        ),
        cost_estimate=cost,
    )(*xs, *wb_slices, bb2, wp_pad, bp_pad)

    logits = logits2.reshape(B, T, vocab)
    # No vocab reduction module -> possible_translation_tokens is None.
    return logits, None


def _reference(unprojected_outs, wb_t, bb, wp_t, bp):
    x = jnp.concatenate(unprojected_outs, axis=2)
    h = jnp.einsum("btk,kd->btd", x, wb_t) + bb
    return jnp.einsum("btd,dv->btv", h, wp_t) + bp


if __name__ == "__main__":
    key = jax.random.PRNGKey(0)

    # Small shapes consistent with the module: two decoders, out_embed_dims=[32,32].
    # Chosen so the demo exercises ragged row and vocab boundary blocks and a
    # (2, 2) grid.
    B, T = 2, 9
    out_embed_dims = [32, 32]
    dim = out_embed_dims[0]
    Dsum = sum(out_embed_dims)
    vocab_size = 200

    keys = jax.random.split(key, len(out_embed_dims) + 2)

    # Decoder outputs [B, T, D_i].
    unprojected_outs = tuple(
        jax.random.normal(keys[i], (B, T, d), dtype=jnp.float32)
        for i, d in enumerate(out_embed_dims)
    )

    # Parameters, pre-transposed once at "load time":
    #   Wb^T: [Dsum, dim], Wp^T: [dim, vocab].
    kwb, kwp = keys[len(out_embed_dims)], keys[len(out_embed_dims) + 1]
    wb_t = (jax.random.uniform(kwb, (Dsum, dim), minval=-1.0, maxval=1.0)
            * (6.0 / (dim + Dsum)) ** 0.5).astype(jnp.float32)
    bb = jnp.linspace(-0.1, 0.1, dim, dtype=jnp.float32)
    wp_t = (jax.random.uniform(kwp, (dim, vocab_size), minval=-1.0, maxval=1.0)
            * (6.0 / (vocab_size + dim)) ** 0.5).astype(jnp.float32)
    bp = jnp.linspace(-0.05, 0.05, vocab_size, dtype=jnp.float32)

    # Load-time prep. Production would use the default compute_dtype=bf16
    # (and optionally out_dtype=bf16); the demo uses f32 for a tight ref check.
    demo_vocab_tile = 128   # tiny tiles purely to exercise the tiled path
    wb_slices, bb2, wp_pad, bp_pad = prepare_bottleneck_params(
        wb_t, bb, wp_t, bp, out_embed_dims,
        compute_dtype=jnp.float32, vocab_tile=demo_vocab_tile,
    )

    logits, ptt = bottleneck_combination_forward(
        unprojected_outs, wb_slices, bb2, wp_pad, bp_pad,
        vocab_size=vocab_size, row_tile=16, vocab_tile=demo_vocab_tile,
    )
    logits = jax.block_until_ready(logits)

    assert logits.shape == (B, T, vocab_size)
    assert ptt is None

    ref = _reference(unprojected_outs, wb_t, bb, wp_t, bp)
    assert jnp.allclose(logits, ref, atol=1e-4, rtol=1e-4), "mismatch vs reference"

    print("KERNEL_OK")
</pallas_src>

<mosaic_0001>
module attributes {stable_mosaic.version = 11 : i64} {
  func.func @kernel(%arg0: i32, %arg1: i32, %arg2: memref<16x32xf32, #tpu.memory_space<vmem>>, %arg3: memref<16x32xf32, #tpu.memory_space<vmem>>, %arg4: memref<32x32xf32, #tpu.memory_space<vmem>>, %arg5: memref<32x32xf32, #tpu.memory_space<vmem>>, %arg6: memref<1x32xf32, #tpu.memory_space<vmem>>, %arg7: memref<32x128xf32, #tpu.memory_space<vmem>>, %arg8: memref<1x128xf32, #tpu.memory_space<vmem>>, %arg9: memref<16x128xf32, #tpu.memory_space<vmem>>, %arg10: memref<16x32xf32, #tpu.memory_space<vmem>>) attributes {dimension_semantics = [#tpu.dimension_semantics<parallel>, #tpu.dimension_semantics<arbitrary>], iteration_bounds = array<i64: 2, 2>, scalar_prefetch = 0 : i64, scratch_operands = 1 : i64, tpu.core_type = #tpu.core_type<tc>, window_params = [{transform_indices = @transform_0, window_bounds = array<i64: 16, 32>}, {transform_indices = @transform_1, window_bounds = array<i64: 16, 32>}, {pipeline_mode = #tpu.pipeline_mode<synchronous>, transform_indices = @transform_2, window_bounds = array<i64: 32, 32>}, {pipeline_mode = #tpu.pipeline_mode<synchronous>, transform_indices = @transform_3, window_bounds = array<i64: 32, 32>}, {pipeline_mode = #tpu.pipeline_mode<synchronous>, transform_indices = @transform_4, window_bounds = array<i64: 1, 32>}, {transform_indices = @transform_5, window_bounds = array<i64: 32, 128>}, {transform_indices = @transform_6, window_bounds = array<i64: 1, 128>}, {transform_indices = @transform_7, window_bounds = array<i64: 16, 128>}]} {
    %c0_i32 = arith.constant 0 : i32
    %0 = arith.cmpi eq, %arg1, %c0_i32 : i32
    %1 = arith.extui %0 : i1 to i32
    %c0_i32_0 = arith.constant 0 : i32
    %2 = arith.cmpi ne, %1, %c0_i32_0 : i32
    scf.if %2 {
      %c0_8 = arith.constant 0 : index
      %c0_9 = arith.constant 0 : index
      %10 = vector.load %arg2[%c0_8, %c0_9] : memref<16x32xf32, #tpu.memory_space<vmem>>, vector<16x32xf32>
      %c0_10 = arith.constant 0 : index
      %c0_11 = arith.constant 0 : index
      %11 = vector.load %arg4[%c0_10, %c0_11] : memref<32x32xf32, #tpu.memory_space<vmem>>, vector<32x32xf32>
      %cst_12 = arith.constant dense<0.000000e+00> : vector<16x32xf32>
      %12 = tpu.matmul %10, %11, %cst_12 {dimension_numbers = #tpu.dot_dimension_numbers<[1], [0], [0], [1], [0, 0, 1, 1], [], []>} : vector<16x32xf32>, vector<32x32xf32>, vector<16x32xf32> -> vector<16x32xf32>
      %c0_13 = arith.constant 0 : index
      %c0_14 = arith.constant 0 : index
      %13 = vector.load %arg3[%c0_13, %c0_14] : memref<16x32xf32, #tpu.memory_space<vmem>>, vector<16x32xf32>
      %c0_15 = arith.constant 0 : index
      %c0_16 = arith.constant 0 : index
      %14 = vector.load %arg5[%c0_15, %c0_16] : memref<32x32xf32, #tpu.memory_space<vmem>>, vector<32x32xf32>
      %cst_17 = arith.constant dense<0.000000e+00> : vector<16x32xf32>
      %15 = tpu.matmul %13, %14, %cst_17 {dimension_numbers = #tpu.dot_dimension_numbers<[1], [0], [0], [1], [0, 0, 1, 1], [], []>} : vector<16x32xf32>, vector<32x32xf32>, vector<16x32xf32> -> vector<16x32xf32>
      %16 = arith.addf %12, %15 : vector<16x32xf32>
      %c0_18 = arith.constant 0 : index
      %c0_19 = arith.constant 0 : index
      %17 = vector.load %arg6[%c0_18, %c0_19] : memref<1x32xf32, #tpu.memory_space<vmem>>, vector<1x32xf32>
      %18 = vector.broadcast %17 : vector<1x32xf32> to vector<16x32xf32>
      %19 = arith.addf %16, %18 : vector<16x32xf32>
      %c0_20 = arith.constant 0 : index
      %c0_21 = arith.constant 0 : index
      %20 = vector.load %arg10[%c0_20, %c0_21] : memref<16x32xf32, #tpu.memory_space<vmem>>, vector<16x32xf32>
      tpu.vector_store %arg10[%c0_20, %c0_21], %19 {strides = array<i32>} : memref<16x32xf32, #tpu.memory_space<vmem>>, vector<16x32xf32>,
    } else {
    }
    %c0 = arith.constant 0 : index
    %c0_1 = arith.constant 0 : index
    %3 = vector.load %arg10[%c0, %c0_1] : memref<16x32xf32, #tpu.memory_space<vmem>>, vector<16x32xf32>
    %c0_2 = arith.constant 0 : index
    %c0_3 = arith.constant 0 : index
    %4 = vector.load %arg7[%c0_2, %c0_3] : memref<32x128xf32, #tpu.memory_space<vmem>>, vector<32x128xf32>
    %cst = arith.constant dense<0.000000e+00> : vector<16x128xf32>
    %5 = tpu.matmul %3, %4, %cst {dimension_numbers = #tpu.dot_dimension_numbers<[1], [0], [0], [1], [0, 0, 1, 1], [], []>} : vector<16x32xf32>, vector<32x128xf32>, vector<16x128xf32> -> vector<16x128xf32>
    %c0_4 = arith.constant 0 : index
    %c0_5 = arith.constant 0 : index
    %6 = vector.load %arg8[%c0_4, %c0_5] : memref<1x128xf32, #tpu.memory_space<vmem>>, vector<1x128xf32>
    %7 = vector.broadcast %6 : vector<1x128xf32> to vector<16x128xf32>
    %8 = arith.addf %5, %7 : vector<16x128xf32>
    %c0_6 = arith.constant 0 : index
    %c0_7 = arith.constant 0 : index
    %9 = vector.load %arg9[%c0_6, %c0_7] : memref<16x128xf32, #tpu.memory_space<vmem>>, vector<16x128xf32>
    tpu.vector_store %arg9[%c0_6, %c0_7], %8 {strides = array<i32>} : memref<16x128xf32, #tpu.memory_space<vmem>>, vector<16x128xf32>,
    return
  }
  func.func @transform_0(%arg0: i32, %arg1: i32) -> (i32, i32) {
    %c0_i32 = arith.constant 0 : i32
    %c0_i32_0 = arith.constant 0 : i32
    return %arg0, %c0_i32 : i32, i32
  }
  func.func @transform_1(%arg0: i32, %arg1: i32) -> (i32, i32) {
    %c0_i32 = arith.constant 0 : i32
    %c0_i32_0 = arith.constant 0 : i32
    return %arg0, %c0_i32 : i32, i32
  }
  func.func @transform_2(%arg0: i32, %arg1: i32) -> (i32, i32) {
    %c0_i32 = arith.constant 0 : i32
    %c0_i32_0 = arith.constant 0 : i32
    %c0_i32_1 = arith.constant 0 : i32
    return %c0_i32, %c0_i32_0 : i32, i32
  }
  func.func @transform_3(%arg0: i32, %arg1: i32) -> (i32, i32) {
    %c0_i32 = arith.constant 0 : i32
    %c0_i32_0 = arith.constant 0 : i32
    %c0_i32_1 = arith.constant 0 : i32
    return %c0_i32, %c0_i32_0 : i32, i32
  }
  func.func @transform_4(%arg0: i32, %arg1: i32) -> (i32, i32) {
    %c0_i32 = arith.constant 0 : i32
    %c0_i32_0 = arith.constant 0 : i32
    %c0_i32_1 = arith.constant 0 : i32
    return %c0_i32, %c0_i32_0 : i32, i32
  }
  func.func @transform_5(%arg0: i32, %arg1: i32) -> (i32, i32) {
    %c0_i32 = arith.constant 0 : i32
    %c0_i32_0 = arith.constant 0 : i32
    return %c0_i32, %arg1 : i32, i32
  }
  func.func @transform_6(%arg0: i32, %arg1: i32) -> (i32, i32) {
    %c0_i32 = arith.constant 0 : i32
    %c0_i32_0 = arith.constant 0 : i32
    return %c0_i32, %arg1 : i32, i32
  }
  func.func @transform_7(%arg0: i32, %arg1: i32) -> (i32, i32) {
    %c0_i32 = arith.constant 0 : i32
    return %arg0, %arg1 : i32, i32
  }
}

</mosaic_0001>

<bundles_post_ra>
// kernel: bottleneck_combination_forward.1
= control target key start
LH: loop header
LB: loop body
LE: loop exit
PB: predicated region body
PF: predicated region fallthrough
CT: control target
= control target key end

     0   :  { %s1624_s0 = inlined_call_operand.vmem [shape: f32[18,32], index: 0, kind: input, shape index: {}]   ;;  %s1625_s1 = inlined_call_operand.vmem [shape: f32[18,32], index: 1, kind: input, shape index: {}]   ;;  %s1626_s2 = inlined_call_operand.vmem [shape: f32[32,32], index: 2, kind: input, shape index: {}]   ;;  %s1627_s3 = inlined_call_operand.vmem [shape: f32[32,32], index: 3, kind: input, shape index: {}]   ;;  %s1628_s4 = inlined_call_operand.vmem [shape: f32[1,32], index: 4, kind: input, shape index: {}]   ;;  %s1629_s5 = inlined_call_operand.vmem [shape: f32[32,256], index: 5, kind: input, shape index: {}]   ;;  %s1630_s6 = inlined_call_operand.vmem [shape: f32[1,256], index: 6, kind: input, shape index: {}]   ;;  %s1631_s7 = inlined_call_operand.vmem [shape: f32[18,200], index: 7, kind: output, shape index: {}]  }
   0x1   :  { %1637 = sst [smem:[#allocation11_spill]] %s1629_s5 }
   0x2   :  { %s1404_s24 = smov 0   ;;  %s1406_s25 = smov 0  }
   0x3   :  { %s1408_s26 = smov 0   ;;  %s1410_s27 = smov 0  }
   0x4   :  { %s1412_s28 = smov 0   ;;  %s1414_s29 = smov 0  }
   0x5   :  { %s1416_s30 = smov 0   ;;  %s1418_s8 = smov 0  }
   0x6   :  { %s1420_s9 = smov 0  }
   0x7 LB: > { %1638 = sst [smem:[#allocation5_spill]] %s1310_s27  ;;  %s998_s10 = sadd.s32 4294967295, %s1330_s9   ;;  %s1330_s9 = sphi %s1420_s9, %s17_s9   ;;  %s1326_s8 = sphi %s1418_s8, %s1651_s8   ;;  %s1322_s30 = sphi %s1416_s30, %s1650_s30   ;;  %s1318_s29 = sphi %s1414_s29, %s1649_s29   ;;  %s1314_s28 = sphi %s1412_s28, %s1648_s28   ;;  %s1310_s27 = sphi %s1410_s27, %s1647_s27   ;;  %s1306_s26 = sphi %s1408_s26, %s1646_s26   ;;  %s1302_s25 = sphi %s1406_s25, %s1653_s25   ;;  %s1298_s24 = sphi %s1404_s24, %s1652_s24  }
   0x8   : > { %1639 = sst [smem:[#allocation6_spill]] %s1322_s30  ;;  %s26_s11 = sadd.s32 1, %s1322_s30 }
   0x9   : > { %1640 = sst [smem:[#allocation7_spill]] %s1326_s8  ;;  %p27_p0 = scmp.ge.s32.totalorder %s26_s11, 2 }
   0xa   : > { %s29_s12 = sadd.s32 1, %s1326_s8  ;;  %s151_s13 = sadd.s32 1, %s1310_s27 }
   0xb   : > { %p158_p1 = scmp.ne.s32.totalorder %s1310_s27, %s1306_s26  ;;  %s1655_s11 = smov (%p27_p0, %s26_s11), 0 }
   0xc   : > { %1641 = sst [smem:[#allocation8_spill]] %s1655_s11  ;;  %s1657_s12 = smov (!%p27_p0, %s29_s12), %s1326_s8 }
   0xd   : > { %s148_s14 = ssub.s32 %s1322_s30, %s1655_s11  ;;  %p159_p2 = scmp.eq.s32.totalorder %s1330_s9, 0 }
   0xe   : > { %p31_p3 = scmp.ge.s32.totalorder %s1657_s12, 2  ;;  %p149_p4 = scmp.eq.s32.totalorder %s148_s14, 0 }
   0xf   : > { %p160_p5 = por %p159_p2, %p158_p1  ;;  %s205_s15 = sadd.s32 1, %s1302_s25 }
  0x10   : > { %s1659_s12 = smov (%p31_p3, %s1657_s12), 0  ;;  %p215_p6 = scmp.ne.s32.totalorder %s1302_s25, %s1298_s24 }
  0x11   : > { %1642 = sst [smem:[#allocation9_spill]] %s1659_s12  ;;  %s200_s17 = ssub.s32 %s1326_s8, %s1659_s12 }
  0x12   : > { %s1465_s16 = scalar_select %p149_p4, %s1310_s27, %s151_s13  }
  0x13   : > { %s202_s18 = sor.u32 %s200_s17, %s148_s14  ;;  %p216_p7 = scmp.eq.s32.totalorder %s998_s10, 3 }
  0x14   : > { %1643 = sst [smem:[#allocation10_spill]] %s1465_s16  ;;  %p203_p8 = scmp.eq.s32.totalorder %s202_s18, 0 }
  0x15   : > { %p1471_p9 = por %p216_p7, %p215_p6  ;;  %p1001_p10 = scmp.ge.s32.totalorder %s1330_s9, 4 }
  0x16   : > { %s1476_s20 = scalar_select %p203_p8, %s1302_s25, %s205_s15  }
  0x17   : > { %247 = sbr.rel (%p1001_p10) target bundleno = 40 (0x28), region = 28 }
  0x1c   : > { %284 = sbr.rel (!%p160_p5) target bundleno = 40 (0x28), region = 40  ;;  %s286_s21 = sand.u32 (%p160_p5), 1, %s1310_s27  }
  0x1d   : > { %s1003_s22 = sshll.u32 (%p160_p5), %s1322_s30, 3  ;;  %s1002_s23 = sshll.u32 (%p160_p5), %s286_s21, 5 }
  0x1e   : > { %s1645_s5 = sld [smem:[#allocation11_spill]] (%p160_p5)  ;;  %s288_s14 = scalar_lea.vmem (%p160_p5), [#allocation3], %s1002_s23 }
  0x24   : > { %s290_s10 = scalar_lea.vmem %s1645_s5, %s1003_s22 }
  0x25   : > { %v325_v0 = vld [vmem:[%s290_s10] sm:$0xff]  ;;  %v327_v1 = vld [vmem:[%s290_s10 + $0x10] sm:$0xff] }
  0x26   : > { %v329_v2 = vld [vmem:[%s290_s10 + $0x20] sm:$0xff]  ;;  %326 = vst [vmem:[%s288_s14] sm:$0xff] %v325_v0  ;;  %328 = vst [vmem:[%s288_s14 + $0x8] sm:$0xff] %v327_v1  ;;  %v331_v3 = vld [vmem:[%s290_s10 + $0x30] sm:$0xff] }
  0x27   : > { %330 = vst [vmem:[%s288_s14 + $0x10] sm:$0xff] %v329_v2  ;;  %332 = vst [vmem:[%s288_s14 + $0x18] sm:$0xff] %v331_v3 }
  0x28 PF: > { %p1004_p11 = scmp.ge.s32.totalorder %s1330_s9, 1  ;;  %p343_p12 = scmp.lt.s32.totalorder %s1330_s9, 5 }
  0x2a   : > { %p344_p13 = pnand %p1004_p11, %p343_p12 }
  0x2b   : > { %s350_s12 = sand.u32 (!%p344_p13), 1, %s1306_s26   ;;  %s398_s15 = sand.u32 (!%p344_p13), 1, %s1298_s24  }
  0x2c   : > { %347 = sbr.rel (%p344_p13) target bundleno = 513 (0x201), region = 82  ;;  %s1005_s17 = sshll.u32 (!%p344_p13), %s350_s12, 5 }
  0x2d   : > { %s1006_s18 = sshll.u32 (!%p344_p13), %s398_s15, 4  ;;  %s1489_s21 = sshll.u32 (!%p344_p13), %s1318_s29, 1 }
  0x2e   : > { %p429_p0 = scmp.lt.s32.totalorder (!%p344_p13), %s1314_s28, 1  ;;  %p406_p1 = scmp.lt.s32.totalorder (!%p344_p13), %s1489_s21, 2 }
  0x2f   : > { %s1509_s30 = scalar_lea.vmem (!%p344_p13), [#allocation3], %s1005_s17  ;;  %s1511_s16 = scalar_lea.vmem (!%p344_p13), [#allocation4], %s1006_s18  }
  0x30   : > { %p1011_p2 = scmp.ne.s32.totalorder (!%p344_p13), %s1314_s28, 0 }
  0x31   : > { %s1494_s22 = scalar_select %p429_p0, %s1314_s28, 1 }
  0x32   : > { %s407_s23 = scalar_select %p406_p1, %s1489_s21, 2 }
  0x33   : > { %s431_s14 = scalar_lea.vmem %s1630_s6, %s1494_s22  ;;  %440 = sbr.rel (%p1011_p2) target bundleno = 267 (0x10b), region = 90 }
  0x34   : > { %s1008_s5 = sshll.u32 %s407_s23, 3 }
  0x35   : > { %s1504_s24 = scalar_lea.vmem %s1624_s0, %s1008_s5  ;;  %s423_s8 = scalar_lea.vmem %s1625_s1, %s1008_s5 }
  0x38   : > { %v452_v4 = vld [vmem:[%s1627_s3 + $0x18] sm:$0xff]  ;;  %v451_v6 = vld [vmem:[%s1627_s3 + $0x10] sm:$0xff]  ;;  %v450_v8 = vld [vmem:[%s1627_s3 + $0x8] sm:$0xff]  ;;  %vm453_vm0 = vcmask 261120  }
  0x39   : > { %v446_v5 = vld [vmem:[%s1626_s2 + $0x18] sm:$0xff]  ;;  %1059 = vmatprep.subr.mxu0 %v452_v4  ;;  %v445_v7 = vld [vmem:[%s1626_s2 + $0x10] sm:$0xff]  ;;  %v444_v9 = vld [vmem:[%s1626_s2 + $0x8] sm:$0xff] }
  0x3a   : > { %1070 = vmatprep.subr.mxu1 %v446_v5  ;;  %1060 = vmatpush3.msra.mxu0 %v452_v4  ;;  %v449_v10 = vld [vmem:[%s1627_s3] sm:$0xff]  ;;  %v448_v14 = vld [vmem:[%s423_s8 + $0x8] sm:$0xff] }
  0x3b   : > { %1071 = vmatpush3.msra.mxu1 %v446_v5  ;;  %1061 = vmatprep.subr.mxu0 %v451_v6  ;;  %v443_v11 = vld [vmem:[%s1626_s2] sm:$0xff]  ;;  %v442_v15 = vld [vmem:[%s1504_s24 + $0x8] sm:$0xff] }
  0x3c   : > { %1072 = vmatprep.subr.mxu1 %v445_v7  ;;  %1062 = vmatpush3.msra.mxu0 %v451_v6  ;;  %v447_v12 = vld [vmem:[%s423_s8] sm:$0xff] }
  0x3d   : > { %1073 = vmatpush3.msra.mxu1 %v445_v7  ;;  %1063 = vmatprep.subr.mxu0 %v450_v8  ;;  %v441_v13 = vld [vmem:[%s1504_s24] sm:$0xff] }
  0x3e   : > { %1074 = vmatprep.subr.mxu1 %v444_v9  ;;  %1064 = vmatpush3.msra.mxu0 %v450_v8  ;;  %v1016_v18 = vld [vmem:[%s1628_s4] ss:$0 sm:$0xff] }
  0x3f   : > { %1075 = vmatpush3.msra.mxu1 %v444_v9  ;;  %1065 = vmatprep.subr.mxu0 %v449_v10 }
  0x40   : > { %1076 = vmatprep.subr.mxu1 %v443_v11  ;;  %1066 = vmatpush3.msra.mxu0 %v449_v10 }
  0x41   : > { %1067 = vmatprep.mubr.msk.f32.mxu0 %vm453_vm0, %v447_v12  ;;  %1077 = vmatpush3.msra.mxu1 %v443_v11 }
  0x42   : > { %1078 = vmatprep.mubr.msk.f32.mxu1 %vm453_vm0, %v441_v13  ;;  %1068 = vmatmul.mubr.msk.f32.vlgmr.msra.gmra.mxu0 %vm453_vm0, %v448_v14 }
  0x43   : > { %1079 = vmatmul.mubr.msk.f32.vlgmr.msra.gmra.mxu1 %vm453_vm0, %v442_v15 }
 0x102   : > { %v1069_v16 = vpop.f32.mrf.mxu0 }
 0x103   : > { %v1080_v17 = vpop.f32.mrf.mxu1 }
 0x104   : > { %v613_v19 = vadd.f32 %v1080_v17, %v1069_v16  ;;  %v526_v20 = vpop.f32.mrf.mxu0 }
 0x105   : > { %v607_v21 = vpop.f32.mrf.mxu1 }
 0x106   : > { %v624_v22 = vadd.f32 %v1016_v18, %v613_v19  ;;  %v608_v23 = vadd.f32 %v607_v21, %v526_v20 }
 0x108   : > { %626 = vst.msk [vmem:[#allocation2 + $0x8] sm:$0xff] %vm453_vm0, %v624_v22  ;;  %v623_v24 = vadd.f32 %v1016_v18, %v608_v23 }
 0x10a   : > { %625 = vst.msk [vmem:[#allocation2] sm:$0xff] %vm453_vm0, %v623_v24 }
 0x10b PF: > { %v632_v25 = vld [vmem:[%s1509_s30 + $0x18] sm:$0xff]  ;;  %v631_v26 = vld [vmem:[%s1509_s30 + $0x10] sm:$0xff]  ;;  %vm640_vm1 = vcmask 261120   ;;  %v630_v28 = vld [vmem:[%s1509_s30 + $0x8] sm:$0xff]  ;;  %s1038_s17 = sshll.u32 (%p1471_p9), %s1318_s29, 2 }
 0x10c   : > { %1081 = vmatprep.subr.mxu0 %v632_v25  ;;  %v629_v29 = vld [vmem:[%s1509_s30] sm:$0xff]  ;;  %v1017_v31 = vld [vmem:[%s431_s14] ss:$0 sm:$0xff]  ;;  %s732_s30 = ssub.s32 (%p1471_p9), 3, %s1489_s21  ;;  %s738_s18 = sadd.s32 (%p1471_p9), %s1314_s28, %s1038_s17 }
 0x10d   : > { %1082 = vmatpush3.msra.mxu0 %v632_v25  ;;  %p733_p3 = scmp.lt.s32.totalorder (%p1471_p9), %s732_s30, 2  ;;  %s1025_s27 = sshll.u32 (%p1471_p9), %s738_s18, 3 }
 0x10e   : > { %1083 = vmatprep.subr.mxu0 %v631_v26  ;;  %s1570_s12 = scalar_lea.vmem (%p1471_p9), %s1631_s7, %s1025_s27  }
 0x10f   : > { %1084 = vmatpush3.msra.mxu0 %v631_v26  ;;  %v628_v30 = vld [vmem:[#allocation2 + $0x8] sm:$0xff] }
 0x110   : > { %1085 = vmatprep.subr.mxu0 %v630_v28 }
 0x111   : > { %v627_v27 = vld [vmem:[#allocation2] sm:$0xff]  ;;  %1086 = vmatpush3.msra.mxu0 %v630_v28 }
 0x112   : > { %1089 = vmatprep.mubr.msk.f32.mxu0 %vm640_vm1, %v627_v27  ;;  %1087 = vmatprep.subr.mxu0 %v629_v29 }
 0x113   : > { %1088 = vmatpush3.msra.mxu0 %v629_v29 }
 0x114   : > { %1090 = vmatmul.mubr.msk.f32.vlgmr.msra.gmra.mxu0 %vm640_vm1, %v628_v30 }
 0x1d4   : > { %v1091_v32 = vpop.f32.mrf.mxu0 }
 0x1d5   : > { %v719_v33 = vadd.f32 %v1091_v32, %v1017_v31  ;;  %730 = sbr.rel (!%p1471_p9) target bundleno = 513 (0x201), region = 94 }
 0x1d6   : > { %v713_v34 = vpop.f32.mrf.mxu0 }
 0x1d7   : > { %723 = vst [vmem:[%s1511_s16 + $0x8] sm:$0xff] %v719_v33  ;;  %v714_v35 = vadd.f32 %v1017_v31, %v713_v34 }
 0x1d9   : > { %722 = vst [vmem:[%s1511_s16] sm:$0xff] %v714_v35 }
 0x1da   : > { %s1661_s30 = smov (!%p733_p3, %s732_s30), 2 }
 0x1db   : > { %s1022_s15 = sshll.u32 %s1661_s30, 7 }
 0x1dc   : > { %p1026_p4 = scmp.eq.s32.totalorder %s1022_s15, 0 }
 0x1dd   : > { %s1574_s19 = sshrl.u32 (!%p1026_p4), %s1661_s30, 1 }
 0x1de   : > { %743 = sbr.rel (%p1026_p4) target bundleno = 513 (0x201), region = 98  ;;  %p1027_p5 = scmp.le.s32.totalorder (!%p1026_p4), %s1574_s19, 0 }
 0x1e3   : > { %925 = sbr.rel (%p1027_p5) target bundleno = 496 (0x1f0), region = 188  ;;  %s1332_s28 = smov (!%p1027_p5), %s1570_s12  }
 0x1e4   : > { %s1336_s29 = smov (!%p1027_p5), %s1511_s16   ;;  %s1340_s21 = smov (!%p1027_p5), 0  }
 0x1e5   : > { %s1344_s13 = smov (!%p1027_p5), 0  }
 0x1e8 LB: >> { %v808_v36 = vld [vmem:[%s1338_s29] sm:$0xff]  ;;  %v810_v37 = vld [vmem:[%s1338_s29 + $0x8] sm:$0xff]  ;;  %s812_s23 = sadd.s32 1, %s1342_s21  ;;  %s802_s13 = sadd.s32 1, %s1346_s13   ;;  %s1346_s13 = sphi %s1344_s13, %s802_s13   ;;  %s1342_s21 = sphi %s1340_s21, %s1341_s21   ;;  %s1338_s29 = sphi %s1336_s29, %s817_s29   ;;  %s1334_s28 = sphi %s1332_s28, %s818_s28  }
 0x1e9   : >> { %809 = vst [vmem:[%s1334_s28] sm:$0xff] %v808_v36  ;;  %811 = vst [vmem:[%s1334_s28 + $0x10] sm:$0xff] %v810_v37  ;;  %p813_p6 = scmp.ge.s32.totalorder %s812_s23, %s1574_s19  ;;  %p801_p7 = scmp.ge.s32.totalorder %s802_s13, %s1574_s19 }
 0x1eb   : >> { %s1663_s23 = smov (%p813_p6, %s812_s23), 0  ;;  %804 = sbr.rel (!%p801_p7) target bundleno = 488 (0x1e8), region = 194 }
 0x1ec   : >> { %s1028_s10 = sshll.u32 %s1663_s23, 4  ;;  %s1029_s11 = sshll.u32 %s1663_s23, 5 }
 0x1ed   : >> { %s817_s29 = scalar_lea.vmem %s1511_s16, %s1028_s10 [#allocation4]   ;;  %s818_s28 = scalar_lea.vmem %s1570_s12, %s1029_s11  }
 0x1ee   : >> { %s1341_s21 = smov %s1663_s23  }
 0x1f0 PF: > { %s1584_s26 = sand.u32 1, %s1661_s30   ;;  %s1039_s5 = sshll.u32 %s1574_s19, 4 }
 0x1f1   : > { %s1588_s8 = scalar_lea.vmem %s1511_s16, %s1039_s5 [#allocation4]   ;;  %s1040_s24 = sshll.u32 %s1574_s19, 5 }
 0x1f2   : > { %s825_s17 = scalar_lea.vmem %s1570_s12, %s1040_s24   ;;  %p1033_p8 = scmp.le.s32.totalorder %s1584_s26, 0 }
 0x1f3   : > { %s1348_s18 = smov (!%p1033_p8), %s825_s17   ;;  %s1352_s27 = smov (!%p1033_p8), %s1588_s8  }
 0x1f4   : > { %939 = sbr.rel (%p1033_p8) target bundleno = 513 (0x201), region = 199  ;;  %s1356_s22 = smov (!%p1033_p8), 0  }
 0x1f5   : > { %s1360_s14 = smov (!%p1033_p8), 0  }
 0x1f9 LB: >> { %v835_v38 = vld [vmem:[%s1354_s27] sm:$0xff]  ;;  %s837_s16 = sadd.s32 1, %s1358_s22  ;;  %s829_s14 = sadd.s32 1, %s1362_s14   ;;  %s1362_s14 = sphi %s1360_s14, %s829_s14   ;;  %s1358_s22 = sphi %s1356_s22, %s1357_s22   ;;  %s1354_s27 = sphi %s1352_s27, %s842_s27   ;;  %s1350_s18 = sphi %s1348_s18, %s843_s18  }
 0x1fa   : >> { %836 = vst [vmem:[%s1350_s18] sm:$0xff] %v835_v38  ;;  %p838_p9 = scmp.ge.s32.totalorder %s837_s16, %s1584_s26  ;;  %p828_p10 = scmp.ge.s32.totalorder %s829_s14, %s1584_s26 }
 0x1fc   : >> { %s1665_s16 = smov (%p838_p9, %s837_s16), 0  ;;  %831 = sbr.rel (!%p828_p10) target bundleno = 505 (0x1f9), region = 205 }
 0x1fd   : >> { %s1034_s30 = sshll.u32 %s1665_s16, 3  ;;  %s1035_s12 = sshll.u32 %s1665_s16, 4 }
 0x1fe   : >> { %s842_s27 = scalar_lea.vmem %s1588_s8, %s1034_s30 [#allocation4]   ;;  %s843_s18 = scalar_lea.vmem %s825_s17, %s1035_s12  }
 0x1ff   : >> { %s1357_s22 = smov %s1665_s16  }
 0x201 PF: > { %s17_s9 = sadd.s32 1, %s1330_s9   ;;  %s1646_s26 = sld [smem:[#allocation5_spill]] }
 0x202   : > { %p14_p11 = scmp.ge.s32.totalorder %s17_s9, 6   ;;  %s1647_s27 = sld [smem:[#allocation10_spill]] }
 0x203   : > { %s1648_s28 = sld [smem:[#allocation6_spill]]  ;;  %s1652_s24 = smov %s1302_s25 }
 0x204   : > { %s1649_s29 = sld [smem:[#allocation7_spill]]  ;;  %s1653_s25 = smov %s1476_s20 }
 0x205   : > { %s1650_s30 = sld [smem:[#allocation8_spill]]  ;;  %16 = sbr.rel (!%p14_p11) target bundleno = 7 (0x7), region = 216 }
 0x206   : > { %s1651_s8 = sld [smem:[#allocation9_spill]] }

</bundles_post_ra>
